<compile_context>
chip_gen: v7x
topology: tpu7x:2x2x1
jax: 0.10.0
libtpu: 0.0.40
codegen_flags: <defaults>
</compile_context>

<pallas_src>
import jax
import jax.numpy as jnp
from jax.experimental import pallas as pl
from jax.experimental.pallas import tpu as pltpu

INPUT_DIM = 256
OUT_DIM = 5 * 26  # 130


def _round_up(x, m):
    return ((x + m - 1) // m) * m


def _choose_tiling(B, max_tb=2048, min_steps=2):
    """Split B (rounded to 8) into near-equal 8-aligned tiles.

    Guarantees: TB % 8 == 0, TB <= round_up(max_tb, 8), B_pad - B < n*8 + 8,
    and >= min_steps grid steps whenever B is large enough (v7x dual-TC split).
    """
    B8 = _round_up(max(B, 1), 8)
    n = max(-(-B8 // max_tb), 1)
    if B8 >= min_steps * 8:
        n = max(n, min_steps)
    TB = _round_up(-(-B8 // n), 8)
    n = -(-B8 // TB)
    return TB, n, TB * n


def policy_head_kernel(h_ref, w_ref, b_ref, o_ref):
    # h_ref: (TB, D) f32   -> cast to bf16 in-kernel (VPU, hidden under DMA/MXU)
    # w_ref: (D, O_pad) bf16, VMEM-resident (constant index_map)
    # b_ref: (1, O) f32,      VMEM-resident
    # o_ref: (TB, O) f32      (O = 130, full-extent last dim -> no padded writeback)
    h_bf = h_ref[...].astype(jnp.bfloat16)
    acc = jnp.dot(h_bf, w_ref[...], preferred_element_type=jnp.float32)  # (TB, O_pad) f32
    o = o_ref.shape[-1]
    o_ref[...] = acc[:, :o] + b_ref[...]


def prepare_params(w, b, *, lane_pad=128):
    """One-time param prep (hoisted out of the per-call path).

    w: (D, O) f32, b: (O,) f32 ->
      w_bf: (D, O_pad) bf16 (O padded to multiple of 128 for the MXU tile),
      b2:   (1, O) f32.
    """
    D, O = w.shape
    O_pad = _round_up(O, lane_pad)
    w_p = w if O_pad == O else jnp.pad(w, ((0, 0), (0, O_pad - O)))
    w_bf = w_p.astype(jnp.bfloat16)
    b2 = b.reshape(1, O).astype(jnp.float32)
    return w_bf, b2


def policy_head(h, w_bf, b2, *, max_tb=2048, force_pallas=False):
    """h: (B, D) f32, w_bf: (D, O_pad) bf16, b2: (1, O) f32 -> (B, O) f32."""
    B, D = h.shape
    O = b2.shape[-1]
    O_pad = w_bf.shape[-1]

    # Tiny batches are pure launch latency in the Pallas path; use fused XLA.
    if B <= 128 and not force_pallas:
        return (
            jnp.dot(h.astype(jnp.bfloat16), w_bf[:, :O],
                    preferred_element_type=jnp.float32)
            + b2
        )

    TB, n_tiles, B_pad = _choose_tiling(B, max_tb=max_tb)
    h_p = h if B_pad == B else jnp.pad(h, ((0, B_pad - B), (0, 0)))

    cost = pl.CostEstimate(
        flops=2 * B_pad * D * O_pad,
        transcendentals=0,
        bytes_accessed=B_pad * D * 4 + D * O_pad * 2 + O * 4 + B_pad * O * 4,
    )

    out = pl.pallas_call(
        policy_head_kernel,
        out_shape=jax.ShapeDtypeStruct((B_pad, O), jnp.float32),
        grid_spec=pltpu.PrefetchScalarGridSpec(
            num_scalar_prefetch=0,
            grid=(n_tiles,),
            in_specs=[
                pl.BlockSpec((TB, D), lambda i: (i, 0)),       # h tile per step
                pl.BlockSpec((D, O_pad), lambda i: (0, 0)),    # W resident
                pl.BlockSpec((1, O), lambda i: (0, 0)),        # bias resident
            ],
            out_specs=pl.BlockSpec((TB, O), lambda i: (i, 0)),
        ),
        compiler_params=pltpu.CompilerParams(
            dimension_semantics=("parallel",),
            vmem_limit_bytes=32 * 1024 * 1024,  # headroom for v5e's 16 MiB default
        ),
        cost_estimate=cost,
    )(h_p, w_bf, b2)

    return out if B_pad == B else out[:B]


def init_params(key, input_dim=INPUT_DIM, out_dim=OUT_DIM):
    # Matches PyTorch nn.Linear default init: U(-1/sqrt(fan_in), 1/sqrt(fan_in))
    kw, kb = jax.random.split(key)
    bound = 1.0 / jnp.sqrt(jnp.float32(input_dim))
    # PyTorch weight is (out, in); store transposed as (in, out) for h @ W.
    w = jax.random.uniform(kw, (input_dim, out_dim), jnp.float32, -bound, bound)
    b = jax.random.uniform(kb, (out_dim,), jnp.float32, -bound, bound)
    return w, b


def _check(out, h, w, b):
    # Tight check vs bf16-input reference (same precision as the kernel's MXU path).
    ref_bf16 = (
        jnp.dot(h.astype(jnp.bfloat16).astype(jnp.float32),
                w.astype(jnp.bfloat16).astype(jnp.float32)) + b
    )
    assert jnp.allclose(out, ref_bf16, atol=1e-4, rtol=1e-4), "mismatch vs bf16 reference"
    # Loose check vs full f32 nn.Linear reference (bf16 rounding tolerance).
    ref_f32 = h @ w + b
    assert jnp.allclose(out, ref_f32, atol=5e-2, rtol=5e-2), "mismatch vs f32 reference"


if __name__ == "__main__":
    key = jax.random.PRNGKey(0)
    k_h1, k_h2, k_p = jax.random.split(key, 3)

    w, b = init_params(k_p)
    w_bf, b2 = prepare_params(w, b)  # hoisted one-time param prep

    # Small batch, Pallas path forced (single grid step).
    B1 = 8
    h1 = jax.random.normal(k_h1, (B1, INPUT_DIM), jnp.float32)
    out1 = jax.block_until_ready(policy_head(h1, w_bf, b2, force_pallas=True))
    assert out1.shape == (B1, OUT_DIM), out1.shape
    _check(out1, h1, w, b)

    # Non-multiple-of-8 batch -> exercises row padding + multi-step grid.
    B2 = 300
    h2 = jax.random.normal(k_h2, (B2, INPUT_DIM), jnp.float32)
    out2 = jax.block_until_ready(policy_head(h2, w_bf, b2, force_pallas=True))
    assert out2.shape == (B2, OUT_DIM), out2.shape
    _check(out2, h2, w, b)

    # Auto-dispatch (tiny batch -> fused XLA path) agrees with the kernel.
    out1_xla = jax.block_until_ready(policy_head(h1, w_bf, b2))
    assert jnp.allclose(out1, out1_xla, atol=1e-4, rtol=1e-4), "dispatch mismatch"

    print("KERNEL_OK")
</pallas_src>

<mosaic_0001>
module attributes {stable_mosaic.version = 11 : i64} {
  func.func @policy_head_kernel(%arg0: i32, %arg1: memref<8x256xf32, #tpu.memory_space<vmem>>, %arg2: memref<256x256xbf16, #tpu.memory_space<vmem>>, %arg3: memref<1x130xf32, #tpu.memory_space<vmem>>, %arg4: memref<8x130xf32, #tpu.memory_space<vmem>>) attributes {dimension_semantics = [#tpu.dimension_semantics<parallel>], iteration_bounds = array<i64: 1>, scalar_prefetch = 0 : i64, scratch_operands = 0 : i64, tpu.core_type = #tpu.core_type<tc>, window_params = [{transform_indices = @transform_0, window_bounds = array<i64: 8, 256>}, {pipeline_mode = #tpu.pipeline_mode<synchronous>, transform_indices = @transform_1, window_bounds = array<i64: 256, 256>}, {pipeline_mode = #tpu.pipeline_mode<synchronous>, transform_indices = @transform_2, window_bounds = array<i64: 1, 130>}, {transform_indices = @transform_3, window_bounds = array<i64: 8, 130>}]} {
    %c0 = arith.constant 0 : index
    %c0_0 = arith.constant 0 : index
    %0 = vector.load %arg1[%c0, %c0_0] : memref<8x256xf32, #tpu.memory_space<vmem>>, vector<8x256xf32>
    %1 = arith.truncf %0 : vector<8x256xf32> to vector<8x256xbf16>
    %c0_1 = arith.constant 0 : index
    %c0_2 = arith.constant 0 : index
    %2 = vector.load %arg2[%c0_1, %c0_2] : memref<256x256xbf16, #tpu.memory_space<vmem>>, vector<256x256xbf16>
    %cst = arith.constant dense<0.000000e+00> : vector<8x256xf32>
    %3 = tpu.matmul %1, %2, %cst {dimension_numbers = #tpu.dot_dimension_numbers<[1], [0], [0], [1], [0, 0, 1, 1], [], []>} : vector<8x256xbf16>, vector<256x256xbf16>, vector<8x256xf32> -> vector<8x256xf32>
    %4 = vector.extract_strided_slice %3 {offsets = [0, 0], sizes = [8, 130], strides = [1, 1]} : vector<8x256xf32> to vector<8x130xf32>
    %c0_3 = arith.constant 0 : index
    %c0_4 = arith.constant 0 : index
    %5 = vector.load %arg3[%c0_3, %c0_4] : memref<1x130xf32, #tpu.memory_space<vmem>>, vector<1x130xf32>
    %6 = vector.broadcast %5 : vector<1x130xf32> to vector<8x130xf32>
    %7 = arith.addf %4, %6 : vector<8x130xf32>
    %c0_5 = arith.constant 0 : index
    %c0_6 = arith.constant 0 : index
    %8 = vector.load %arg4[%c0_5, %c0_6] : memref<8x130xf32, #tpu.memory_space<vmem>>, vector<8x130xf32>
    tpu.vector_store %arg4[%c0_5, %c0_6], %7 {strides = array<i32>} : memref<8x130xf32, #tpu.memory_space<vmem>>, vector<8x130xf32>,
    return
  }
  func.func @transform_0(%arg0: i32) -> (i32, i32) {
    %c0_i32 = arith.constant 0 : i32
    %c0_i32_0 = arith.constant 0 : i32
    return %arg0, %c0_i32 : i32, i32
  }
  func.func @transform_1(%arg0: i32) -> (i32, i32) {
    %c0_i32 = arith.constant 0 : i32
    %c0_i32_0 = arith.constant 0 : i32
    %c0_i32_1 = arith.constant 0 : i32
    return %c0_i32, %c0_i32_0 : i32, i32
  }
  func.func @transform_2(%arg0: i32) -> (i32, i32) {
    %c0_i32 = arith.constant 0 : i32
    %c0_i32_0 = arith.constant 0 : i32
    %c0_i32_1 = arith.constant 0 : i32
    return %c0_i32, %c0_i32_0 : i32, i32
  }
  func.func @transform_3(%arg0: i32) -> (i32, i32) {
    %c0_i32 = arith.constant 0 : i32
    %c0_i32_0 = arith.constant 0 : i32
    return %arg0, %c0_i32 : i32, i32
  }
}

</mosaic_0001>

<bundles_post_ra>
// kernel: tpu_custom_call.1
= control target key start
LH: loop header
LB: loop body
LE: loop exit
PB: predicated region body
PF: predicated region fallthrough
CT: control target
= control target key end

     0   :  { %8 = vsyncpa [#allocation3], 0  ;;  %s539_s0 = inlined_call_operand.hbm [shape: f32[8,256], index: 0, kind: input, shape index: {}]   ;;  %s540_s1 = inlined_call_operand.hbm [shape: bf16[256,256], index: 1, kind: input, shape index: {}]   ;;  %s541_s2 = inlined_call_operand.vmem [shape: f32[1,130], index: 2, kind: input, shape index: {}]   ;;  %s542_s3 = inlined_call_operand.hbm [shape: f32[8,130], index: 3, kind: output, shape index: {}]  }
   0x1   :  { %9 = vsyncpa [#allocation6], 0 }
   0x2   :  { %10 = vsyncpa [#allocation4], 0  ;;  %s468_s12 = smov [#allocation2]   ;;  %s469_s14 = smov [#allocation5]  }
   0x3   :  { %s17_s13 = sshll.u32 %s468_s12, 4  ;;  %s26_s15 = sshll.u32 %s469_s14, 4  ;;  %s18_s13 = int_to_ptr.vmem [resolvable:$true] %s17_s13  ;;  %s493_s15 = int_to_ptr.vmem [resolvable:$true] %s26_s15 }
   0x4   :  { %s396_s18 = scalar_lea.hbm %s539_s0, 256 }
   0x5   :  { %p397_p0 = scmp.ne.s32.totalorder %s539_s0, %s396_s18  ;;  %p400_p1 = scmp.lt.u32.totalorder %s396_s18, %s539_s0 }
   0x7   :  { %p402_p2 = pnand %p400_p1, %p397_p0 }
   0x9   :  { %405 = shalt.err (!%p402_p2)
}
   0xa   :  { %s406_s23 = scalar_lea.vmem %s18_s13, 256  ;;  %p411_p4 = scmp.lt.s32.totalorder %s18_s13, %s18_s13 }
   0xb   :  { %p407_p3 = scmp.ne.s32.totalorder %s18_s13, %s406_s23  ;;  %p412_p5 = scmp.lt.s32.totalorder %s406_s23, %s406_s23 }
   0xd   :  { %p413_p6 = por %p412_p5, %p411_p4 }
   0xf   :  { %p414_p7 = pnand %p413_p6, %p407_p3 }
  0x11   :  { %417 = shalt.err (!%p414_p7)
}
  0x12   :  { %20 = dma.hbm_to_vmem [thread:$0]  %s539_s0, 256, %s18_s13, [#allocation3]  }
  0x13   :  { %s418_s28 = scalar_lea.hbm %s540_s1, 4096 }
  0x14   :  { %p419_p8 = scmp.ne.s32.totalorder %s540_s1, %s418_s28  ;;  %p422_p9 = scmp.lt.u32.totalorder %s418_s28, %s540_s1 }
  0x16   :  { %p424_p10 = pnand %p422_p9, %p419_p8 }
  0x18   :  { %427 = shalt.err (!%p424_p10)
}
  0x19   :  { %s428_s6 = scalar_lea.vmem %s493_s15, 4096  ;;  %p433_p12 = scmp.lt.s32.totalorder %s493_s15, %s493_s15 }
  0x1a   :  { %p429_p11 = scmp.ne.s32.totalorder %s493_s15, %s428_s6  ;;  %p434_p13 = scmp.lt.s32.totalorder %s428_s6, %s428_s6 }
  0x1c   :  { %p435_p0 = por %p434_p13, %p433_p12 }
  0x1e   :  { %p436_p1 = pnand %p435_p0, %p429_p11 }
  0x20   :  { %439 = shalt.err (!%p436_p1)
}
  0x21   :  { %s470_s0 = smov 128   ;;  %s471_s7 = smov 8  }
  0x22   :  { %32 = dma.hbm_to_vmem [thread:$0]  %s540_s1, 4096, %s493_s15, [#allocation6], %s470_s0, %s470_s0, %s471_s7  }
  0x23   :  { %462 = dma.done.wait [#allocation3], 256  }
  0x24   :  { %463 = vsyncadd [#allocation3], 4294967040 }
  0x25   :  { %464 = dma.done.wait [#allocation6], 4096  }
  0x26   :  { %465 = vsyncadd [#allocation6], 4294963200  ;;  %v348_v0 = vld [vmem:[#allocation5 + $0x4] ss:$8 sps:$4 sm:$0xff]   ;;  %v350_v1 = vld [vmem:[#allocation5] ss:$8 sps:$4 sm:$0xff]   ;;  %v280_v36 = vlaneseq }
  0x27   :  { %237 = vmatprep.subr.bf16.mxu0 %v348_v0  ;;  %v351_v2 = vld [vmem:[#allocation5 + $0x14] ss:$8 sps:$4 sm:$0xff]   ;;  %v353_v3 = vld [vmem:[#allocation5 + $0x10] ss:$8 sps:$4 sm:$0xff]   ;;  %v354_v4 = vld [vmem:[#allocation5 + $0x24] ss:$8 sps:$4 sm:$0xff]  }
  0x28   :  { %238 = vmatpush1.bf16.msra.mxu0 %v350_v1  ;;  %v356_v5 = vld [vmem:[#allocation5 + $0x20] ss:$8 sps:$4 sm:$0xff]   ;;  %v357_v6 = vld [vmem:[#allocation5 + $0x34] ss:$8 sps:$4 sm:$0xff]   ;;  %v359_v7 = vld [vmem:[#allocation5 + $0x30] ss:$8 sps:$4 sm:$0xff]  }
  0x29   :  { %239 = vmatprep.subr.bf16.mxu0 %v351_v2  ;;  %v360_v8 = vld [vmem:[#allocation5 + $0x44] ss:$8 sps:$4 sm:$0xff]   ;;  %v362_v9 = vld [vmem:[#allocation5 + $0x40] ss:$8 sps:$4 sm:$0xff]   ;;  %v363_v10 = vld [vmem:[#allocation5 + $0x54] ss:$8 sps:$4 sm:$0xff]  }
  0x2a   :  { %v365_v11 = vld [vmem:[#allocation5 + $0x50] ss:$8 sps:$4 sm:$0xff]   ;;  %v366_v12 = vld [vmem:[#allocation5 + $0x64] ss:$8 sps:$4 sm:$0xff]   ;;  %v368_v15 = vld [vmem:[#allocation5 + $0x60] ss:$8 sps:$4 sm:$0xff]  }
  0x2b   :  { %v42_v13 = vld [vmem:[#allocation2 + $0x8] sm:$0xff]  ;;  %v372_v18 = vld [vmem:[#allocation5 + $0x84] ss:$8 sps:$4 sm:$0xff]   ;;  %v374_v19 = vld [vmem:[#allocation5 + $0x80] ss:$8 sps:$4 sm:$0xff]   ;;  %v281_v37 = vshrl.u32 %v280_v36, 7 }
  0x2c   :  { %240 = vmatpush1.bf16.msra.mxu0 %v353_v3  ;;  %v44_v14 = vpack.c.bf16 %v42_v13, %v42_v13  ;;  %v369_v16 = vld [vmem:[#allocation5 + $0x74] ss:$8 sps:$4 sm:$0xff]   ;;  %v371_v17 = vld [vmem:[#allocation5 + $0x70] ss:$8 sps:$4 sm:$0xff]   ;;  %v378_v22 = vld [vmem:[#allocation5 + $0xa4] ss:$8 sps:$4 sm:$0xff]  }
  0x2d   :  { %241 = vmatprep.subr.bf16.mxu0 %v354_v4  ;;  %v375_v20 = vld [vmem:[#allocation5 + $0x94] ss:$8 sps:$4 sm:$0xff]   ;;  %v377_v21 = vld [vmem:[#allocation5 + $0x90] ss:$8 sps:$4 sm:$0xff]   ;;  %v380_v23 = vld [vmem:[#allocation5 + $0xa0] ss:$8 sps:$4 sm:$0xff]  }
  0x2e   :  { %269 = vmatprep.mubr.bf16.mxu0 %v44_v14  ;;  %v381_v24 = vld [vmem:[#allocation5 + $0xb4] ss:$8 sps:$4 sm:$0xff]   ;;  %v383_v25 = vld [vmem:[#allocation5 + $0xb0] ss:$8 sps:$4 sm:$0xff]   ;;  %v384_v26 = vld [vmem:[#allocation5 + $0xc4] ss:$8 sps:$4 sm:$0xff]  }
  0x2f   :  { %v386_v27 = vld [vmem:[#allocation5 + $0xc0] ss:$8 sps:$4 sm:$0xff]   ;;  %v387_v28 = vld [vmem:[#allocation5 + $0xd4] ss:$8 sps:$4 sm:$0xff]   ;;  %v389_v29 = vld [vmem:[#allocation5 + $0xd0] ss:$8 sps:$4 sm:$0xff]  }
  0x30   :  { %242 = vmatpush1.bf16.msra.mxu0 %v356_v5  ;;  %v390_v30 = vld [vmem:[#allocation5 + $0xe4] ss:$8 sps:$4 sm:$0xff]   ;;  %v392_v31 = vld [vmem:[#allocation5 + $0xe0] ss:$8 sps:$4 sm:$0xff]   ;;  %v393_v32 = vld [vmem:[#allocation5 + $0xf4] ss:$8 sps:$4 sm:$0xff]  }
  0x31   :  { %243 = vmatprep.subr.bf16.mxu0 %v357_v6  ;;  %v395_v33 = vld [vmem:[#allocation5 + $0xf0] ss:$8 sps:$4 sm:$0xff]   ;;  %v282_v38 = vsub.s32 0, %v281_v37  ;;  %v286_v40 = vsub.s32 1, %v281_v37  ;;  %s472_s11 = smov [#allocation7]   ;;  %vm293_vm0 = vcmask 15360  }
  0x32   :  { %v41_v34 = vld [vmem:[#allocation2] sm:$0xff]  ;;  %s301_s12 = sshll.u32 %s472_s11, 4  ;;  %s302_s12 = int_to_ptr.vmem [resolvable:$true] %s301_s12 }
  0x33   :  { %v43_v35 = vpack.c.bf16 %v41_v34, %v41_v34  ;;  %v278_v39 = vld [vmem:[%s541_s2] sm:$0x3]  ;;  %s440_s13 = scalar_lea.vmem %s302_s12, 256  ;;  %p445_p3 = scmp.lt.s32.totalorder %s302_s12, %s302_s12 }
  0x34   :  { %244 = vmatpush1.bf16.msra.mxu0 %v359_v7  ;;  %v283_v41 = vrot.slane %v278_v39, %v282_v38  ;;  %v287_v42 = vrot.slane %v278_v39, %v286_v40  ;;  %p441_p2 = scmp.ne.s32.totalorder %s302_s12, %s440_s13  ;;  %p446_p4 = scmp.lt.s32.totalorder %s440_s13, %s440_s13 }
  0x35   :  { %245 = vmatprep.subr.bf16.mxu0 %v360_v8 }
  0x36   :  { %p447_p5 = por %p446_p4, %p445_p3 }
  0x38   :  { %246 = vmatpush1.bf16.msra.mxu0 %v362_v9  ;;  %p448_p6 = pnand %p447_p5, %p441_p2 }
  0x39   :  { %247 = vmatprep.subr.bf16.mxu0 %v363_v10 }
  0x3c   :  { %248 = vmatpush1.bf16.msra.mxu0 %v365_v11 }
  0x3d   :  { %249 = vmatprep.subr.bf16.mxu0 %v366_v12 }
  0x40   :  { %250 = vmatpush1.bf16.msra.mxu0 %v368_v15 }
  0x41   :  { %251 = vmatprep.subr.bf16.mxu0 %v369_v16 }
  0x44   :  { %252 = vmatpush1.bf16.msra.mxu0 %v371_v17 }
  0x45   :  { %253 = vmatprep.subr.bf16.mxu0 %v372_v18 }
  0x48   :  { %254 = vmatpush1.bf16.msra.mxu0 %v374_v19 }
  0x49   :  { %255 = vmatprep.subr.bf16.mxu0 %v375_v20 }
  0x4c   :  { %256 = vmatpush1.bf16.msra.mxu0 %v377_v21 }
  0x4d   :  { %257 = vmatprep.subr.bf16.mxu0 %v378_v22 }
  0x50   :  { %258 = vmatpush1.bf16.msra.mxu0 %v380_v23 }
  0x51   :  { %259 = vmatprep.subr.bf16.mxu0 %v381_v24 }
  0x54   :  { %260 = vmatpush1.bf16.msra.mxu0 %v383_v25 }
  0x55   :  { %261 = vmatprep.subr.bf16.mxu0 %v384_v26 }
  0x58   :  { %262 = vmatpush1.bf16.msra.mxu0 %v386_v27 }
  0x59   :  { %263 = vmatprep.subr.bf16.mxu0 %v387_v28 }
  0x5c   :  { %264 = vmatpush1.bf16.msra.mxu0 %v389_v29 }
  0x5d   :  { %265 = vmatprep.subr.bf16.mxu0 %v390_v30 }
  0x60   :  { %266 = vmatpush1.bf16.msra.mxu0 %v392_v31 }
  0x61   :  { %267 = vmatprep.subr.bf16.mxu0 %v393_v32 }
  0x64   :  { %268 = vmatpush1.bf16.msra.mxu0 %v395_v33 }
  0x67   :  { %270 = vmatmul.mubr.bf16.vlgmr.msra.gmra.mrb[0].mxu0 %v43_v35 }
 0x13a   :  { %v271_v43 = vpop.f32.mrb[0].mxu0 }
 0x13b   :  { %v290_v44 = vadd.f32 %v283_v41, %v271_v43  ;;  %v273_v45 = vpop.f32.mrb[1].mxu0 }
 0x13c   :  { %v291_v46 = vadd.f32 %v287_v42, %v273_v45  ;;  %v275_v47 = vpop.f32.mrb[2].mxu0 }
 0x13d   :  { %292 = vst [vmem:[#allocation7] sm:$0xff] %v290_v44  ;;  %v276_v48 = vpop.f32.mrb[3].mxu0 }
 0x13e   :  { %294 = vst.msk [vmem:[#allocation7 + $0x8] sm:$0xff] %vm293_vm0, %v291_v46 }
 0x13f   :  { %451 = shalt.err (!%p448_p6)
}
 0x140   :  { %s452_s15 = scalar_lea.hbm %s542_s3, 256 }
 0x141   :  { %p453_p7 = scmp.ne.s32.totalorder %s542_s3, %s452_s15  ;;  %p456_p8 = scmp.lt.u32.totalorder %s452_s15, %s542_s3 }
 0x143   :  { %p458_p9 = pnand %p456_p8, %p453_p7 }
 0x145   :  { %461 = shalt.err (!%p458_p9)
}
 0x146   :  { %304 = dma.vmem_to_hbm [thread:$0]  %s302_s12, 256, %s542_s3, [#allocation4]  }
 0x147   :  { %466 = dma.done.wait [#allocation4], 256  }
 0x148   :  { %467 = vsyncadd [#allocation4], 4294967040 }
 0x149   :  { %308 = vsyncpa [#allocation3], 1 }
 0x14a   :  { %309 = vsyncpa [#allocation6], 1 }
 0x14b   :  { %310 = vsyncpa [#allocation4], 1 }

</bundles_post_ra>
